<compile_context>
chip_gen: v7x
topology: tpu7x:2x2x1
jax: 0.10.0
libtpu: 0.0.40
codegen_flags: <defaults>
</compile_context>

<pallas_src>
import math

import jax
import jax.numpy as jnp
from jax.experimental import pallas as pl
from jax.experimental.pallas import tpu as pltpu


def attention_merge_kernel(values_ref, mask_ref, w_ref, b_ref, q_ref, out_ref):
    v = values_ref[...]                                   # (TB, L, H), input dtype
    tb = v.shape[0]
    mcol = mask_ref[...].astype(jnp.float32)              # (TB, L, 1) mask column
    w = w_ref[...]                                        # (H, A)
    bias = b_ref[...].astype(jnp.float32)                 # (1, A)
    q_row = q_ref[...]                                    # (1, A) f32, scale folded in

    # keys = tanh(values @ W + b): batched MXU matmul with f32 accumulation.
    w_b = jnp.broadcast_to(w, (tb,) + w.shape)            # (TB, H, A)
    z = jnp.einsum("blh,bha->bla", v, w_b,
                   preferred_element_type=jnp.float32)    # (TB, L, A)
    keys = jnp.tanh(z + bias)                             # f32

    # Attention logits as a per-batch (L, 1) column: VPU multiply + lane
    # reduce (avoids an N=1 MXU mat-vec).  1/sqrt(A*var(q)) already in q_row.
    scores = jnp.sum(keys * q_row, axis=-1, keepdims=True)   # (TB, L, 1)

    # The mask term is constant over H, so the softmax collapses to a column
    # softmax over L -- no (L, H) exp or (L, H) reductions needed.
    s = scores * mcol
    s_max = jnp.max(s, axis=1, keepdims=True)
    e = jnp.exp(s - s_max)
    probs = e / jnp.sum(e, axis=1, keepdims=True)             # (TB, L, 1)
    prob_sum = jnp.sum(probs, axis=1)                         # (TB, 1)

    # context = sum_L(probs + values) = sum_L(values) + sum_L(probs) broadcast.
    vsum = jnp.sum(v.astype(jnp.float32), axis=1)             # (TB, H)
    out_ref[...] = (vsum + prob_sum).astype(out_ref.dtype)    # (TB, H)


def attention_merge(values, W, bias, query, attention_size, mask=None, tile_b=8):
    """Pallas implementation of AttentionMerge.forward (eval mode).

    values: (B, L, H); W: (H, A) (transposed vs. nn.Linear); bias: (A,);
    query: (A, 1); mask: optional (B, L) of 0/1.  Returns (B, H).
    """
    B, L, H = values.shape
    A = attention_size

    # Mask as a (B, L, 1) column -- never materialize it at (B, L, H).
    if mask is None:
        mask_col = jnp.zeros((B, L, 1), dtype=jnp.float32)
    else:
        mask_col = ((1.0 - mask.astype(jnp.float32)) * -1000.0).reshape(B, L, 1)

    # Fold 1/sqrt(A * var(query)) (torch.var is unbiased) into the query and
    # keep it as a (1, A) row so the in-kernel score is a lane reduce.
    qf = query.astype(jnp.float32)
    q_var = jnp.var(qf, ddof=1)
    q_row = (qf / jnp.sqrt(A * q_var)).reshape(1, A)
    bias_row = bias.astype(jnp.float32).reshape(1, A)
    w = W.astype(values.dtype)   # stream weights in the activation dtype

    # Batch tiling: several batches per grid step (fills output sublanes,
    # amortizes grid-step overhead, gives the grid parallel work on v7x).
    if B <= tile_b:
        tb, b_pad = B, B
    else:
        tb = tile_b                      # multiple of 8 -> legal (tb, H) out block
        b_pad = -(-B // tb) * tb
    if b_pad != B:
        pad = b_pad - B
        values = jnp.pad(values, ((0, pad), (0, 0), (0, 0)))
        mask_col = jnp.pad(mask_col, ((0, pad), (0, 0), (0, 0)))

    out = pl.pallas_call(
        attention_merge_kernel,
        out_shape=jax.ShapeDtypeStruct((b_pad, H), values.dtype),
        grid_spec=pltpu.PrefetchScalarGridSpec(
            num_scalar_prefetch=0,
            grid=(b_pad // tb,),
            in_specs=[
                pl.BlockSpec((tb, L, H), lambda i: (i, 0, 0)),   # values (batch tile)
                pl.BlockSpec((tb, L, 1), lambda i: (i, 0, 0)),   # mask column
                pl.BlockSpec((H, A), lambda i: (0, 0)),          # hidden_layer weight
                pl.BlockSpec((1, A), lambda i: (0, 0)),          # hidden_layer bias
                pl.BlockSpec((1, A), lambda i: (0, 0)),          # scaled query row
            ],
            out_specs=pl.BlockSpec((tb, H), lambda i: (i, 0)),
        ),
        compiler_params=pltpu.CompilerParams(
            dimension_semantics=("parallel",),
        ),
    )(values, mask_col, w, bias_row, q_row)
    return out[:B]


def attention_merge_ref(values, W, bias, query, attention_size, mask=None):
    """Pure-JAX reference mirroring the PyTorch forward exactly."""
    if mask is None:
        mask_f = jnp.zeros_like(values)
    else:
        mask_f = (1.0 - mask[..., None].astype(jnp.float32)) * -1000.0
    keys = jnp.tanh(values @ W + bias)
    q_var = jnp.var(query, ddof=1)
    attn = keys @ query / jnp.sqrt(attention_size * q_var)     # (B, L, 1)
    attn = jax.nn.softmax(attn * mask_f, axis=1)
    return jnp.sum(attn + values, axis=1)


if __name__ == "__main__":
    # Small shapes consistent with the module: (B, L, hidden_size) input.
    B, L, H, A = 2, 8, 32, 16

    key = jax.random.PRNGKey(0)
    k_v, k_w, k_b, k_q, k_m = jax.random.split(key, 5)

    values = jax.random.normal(k_v, (B, L, H), dtype=jnp.float32)
    # Deterministic parameter init (shapes from __init__):
    #   hidden_layer: Linear(H -> A)  -> W (H, A), bias (A,)
    #   query_: (A, 1), normal(0, 0.02)
    W = jax.random.normal(k_w, (H, A), dtype=jnp.float32) * (1.0 / math.sqrt(H))
    bias = jax.random.normal(k_b, (A,), dtype=jnp.float32) * 0.01
    query = jax.random.normal(k_q, (A, 1), dtype=jnp.float32) * 0.02

    # mask=None path (module default)
    out = attention_merge(values, W, bias, query, A, mask=None)
    out = jax.block_until_ready(out)
    ref = attention_merge_ref(values, W, bias, query, A, mask=None)
    assert out.shape == (B, H), out.shape
    assert jnp.allclose(out, ref, atol=1e-5, rtol=1e-5), (
        f"max abs err {float(jnp.max(jnp.abs(out - ref)))}")

    # masked path
    mask = (jax.random.uniform(k_m, (B, L)) > 0.3).astype(jnp.float32)
    out_m = jax.block_until_ready(
        attention_merge(values, W, bias, query, A, mask=mask))
    ref_m = attention_merge_ref(values, W, bias, query, A, mask=mask)
    assert jnp.allclose(out_m, ref_m, atol=1e-5, rtol=1e-5), (
        f"max abs err {float(jnp.max(jnp.abs(out_m - ref_m)))}")

    print("KERNEL_OK")
</pallas_src>

<mosaic_0001>
module attributes {stable_mosaic.version = 11 : i64} {
  func.func @attention_merge_kernel(%arg0: i32, %arg1: memref<2x8x32xf32, #tpu.memory_space<vmem>>, %arg2: memref<2x8x1xf32, #tpu.memory_space<vmem>>, %arg3: memref<32x16xf32, #tpu.memory_space<vmem>>, %arg4: memref<1x16xf32, #tpu.memory_space<vmem>>, %arg5: memref<1x16xf32, #tpu.memory_space<vmem>>, %arg6: memref<2x32xf32, #tpu.memory_space<vmem>>) attributes {dimension_semantics = [#tpu.dimension_semantics<parallel>], iteration_bounds = array<i64: 1>, scalar_prefetch = 0 : i64, scratch_operands = 0 : i64, tpu.core_type = #tpu.core_type<tc>, window_params = [{transform_indices = @transform_0, window_bounds = array<i64: 2, 8, 32>}, {transform_indices = @transform_1, window_bounds = array<i64: 2, 8, 1>}, {pipeline_mode = #tpu.pipeline_mode<synchronous>, transform_indices = @transform_2, window_bounds = array<i64: 32, 16>}, {pipeline_mode = #tpu.pipeline_mode<synchronous>, transform_indices = @transform_3, window_bounds = array<i64: 1, 16>}, {pipeline_mode = #tpu.pipeline_mode<synchronous>, transform_indices = @transform_4, window_bounds = array<i64: 1, 16>}, {transform_indices = @transform_5, window_bounds = array<i64: 2, 32>}]} {
    %c0 = arith.constant 0 : index
    %c0_0 = arith.constant 0 : index
    %c0_1 = arith.constant 0 : index
    %0 = vector.load %arg1[%c0, %c0_0, %c0_1] : memref<2x8x32xf32, #tpu.memory_space<vmem>>, vector<2x8x32xf32>
    %c0_2 = arith.constant 0 : index
    %c0_3 = arith.constant 0 : index
    %c0_4 = arith.constant 0 : index
    %1 = vector.load %arg2[%c0_2, %c0_3, %c0_4] : memref<2x8x1xf32, #tpu.memory_space<vmem>>, vector<2x8x1xf32>
    %c0_5 = arith.constant 0 : index
    %c0_6 = arith.constant 0 : index
    %2 = vector.load %arg3[%c0_5, %c0_6] : memref<32x16xf32, #tpu.memory_space<vmem>>, vector<32x16xf32>
    %c0_7 = arith.constant 0 : index
    %c0_8 = arith.constant 0 : index
    %3 = vector.load %arg4[%c0_7, %c0_8] : memref<1x16xf32, #tpu.memory_space<vmem>>, vector<1x16xf32>
    %c0_9 = arith.constant 0 : index
    %c0_10 = arith.constant 0 : index
    %4 = vector.load %arg5[%c0_9, %c0_10] : memref<1x16xf32, #tpu.memory_space<vmem>>, vector<1x16xf32>
    %5 = vector.shape_cast %2 : vector<32x16xf32> to vector<1x32x16xf32>
    %6 = vector.broadcast %5 : vector<1x32x16xf32> to vector<2x32x16xf32>
    "tpu.trace_start"() <{level = 10 : i32, message = "blh,bha->bla"}> : () -> ()
    %cst = arith.constant dense<0.000000e+00> : vector<2x8x16xf32>
    %7 = tpu.matmul %0, %6, %cst {dimension_numbers = #tpu.dot_dimension_numbers<[2], [1], [1], [2], [0, 0, 0, 1, 1, 2], [0], [0]>} : vector<2x8x32xf32>, vector<2x32x16xf32>, vector<2x8x16xf32> -> vector<2x8x16xf32>
    "tpu.trace_stop"() : () -> ()
    %8 = vector.shape_cast %3 : vector<1x16xf32> to vector<1x1x16xf32>
    %9 = vector.broadcast %8 : vector<1x1x16xf32> to vector<2x8x16xf32>
    %10 = arith.addf %7, %9 : vector<2x8x16xf32>
    %11 = math.tanh %10 : vector<2x8x16xf32>
    %12 = vector.shape_cast %4 : vector<1x16xf32> to vector<1x1x16xf32>
    %13 = vector.broadcast %12 : vector<1x1x16xf32> to vector<2x8x16xf32>
    %14 = arith.mulf %11, %13 : vector<2x8x16xf32>
    %cst_11 = arith.constant dense<0.000000e+00> : vector<2x8xf32>
    %15 = vector.multi_reduction <add>, %14, %cst_11 [2] : vector<2x8x16xf32> to vector<2x8xf32>
    %16 = vector.shape_cast %15 : vector<2x8xf32> to vector<2x8x1xf32>
    %17 = arith.mulf %16, %1 : vector<2x8x1xf32>
    %cst_12 = arith.constant dense<0xFF800000> : vector<2x1xf32>
    %18 = vector.multi_reduction <maximumf>, %17, %cst_12 [1] : vector<2x8x1xf32> to vector<2x1xf32>
    %19 = vector.shape_cast %18 : vector<2x1xf32> to vector<2x1x1xf32>
    %20 = vector.broadcast %19 : vector<2x1x1xf32> to vector<2x8x1xf32>
    %21 = arith.subf %17, %20 : vector<2x8x1xf32>
    %22 = math.exp %21 : vector<2x8x1xf32>
    %cst_13 = arith.constant dense<0.000000e+00> : vector<2x1xf32>
    %23 = vector.multi_reduction <add>, %22, %cst_13 [1] : vector<2x8x1xf32> to vector<2x1xf32>
    %24 = vector.shape_cast %23 : vector<2x1xf32> to vector<2x1x1xf32>
    %25 = vector.broadcast %24 : vector<2x1x1xf32> to vector<2x8x1xf32>
    %26 = arith.divf %22, %25 : vector<2x8x1xf32>
    %cst_14 = arith.constant dense<0.000000e+00> : vector<2x1xf32>
    %27 = vector.multi_reduction <add>, %26, %cst_14 [1] : vector<2x8x1xf32> to vector<2x1xf32>
    %cst_15 = arith.constant dense<0.000000e+00> : vector<2x32xf32>
    %28 = vector.multi_reduction <add>, %0, %cst_15 [1] : vector<2x8x32xf32> to vector<2x32xf32>
    %29 = vector.broadcast %27 : vector<2x1xf32> to vector<2x32xf32>
    %30 = arith.addf %28, %29 : vector<2x32xf32>
    %c0_16 = arith.constant 0 : index
    %c0_17 = arith.constant 0 : index
    %31 = vector.load %arg6[%c0_16, %c0_17] : memref<2x32xf32, #tpu.memory_space<vmem>>, vector<2x32xf32>
    tpu.vector_store %arg6[%c0_16, %c0_17], %30 {strides = array<i32>} : memref<2x32xf32, #tpu.memory_space<vmem>>, vector<2x32xf32>,
    return
  }
  func.func @transform_0(%arg0: i32) -> (i32, i32, i32) {
    %c0_i32 = arith.constant 0 : i32
    %c0_i32_0 = arith.constant 0 : i32
    %c0_i32_1 = arith.constant 0 : i32
    return %arg0, %c0_i32, %c0_i32_0 : i32, i32, i32
  }
  func.func @transform_1(%arg0: i32) -> (i32, i32, i32) {
    %c0_i32 = arith.constant 0 : i32
    %c0_i32_0 = arith.constant 0 : i32
    %c0_i32_1 = arith.constant 0 : i32
    return %arg0, %c0_i32, %c0_i32_0 : i32, i32, i32
  }
  func.func @transform_2(%arg0: i32) -> (i32, i32) {
    %c0_i32 = arith.constant 0 : i32
    %c0_i32_0 = arith.constant 0 : i32
    %c0_i32_1 = arith.constant 0 : i32
    return %c0_i32, %c0_i32_0 : i32, i32
  }
  func.func @transform_3(%arg0: i32) -> (i32, i32) {
    %c0_i32 = arith.constant 0 : i32
    %c0_i32_0 = arith.constant 0 : i32
    %c0_i32_1 = arith.constant 0 : i32
    return %c0_i32, %c0_i32_0 : i32, i32
  }
  func.func @transform_4(%arg0: i32) -> (i32, i32) {
    %c0_i32 = arith.constant 0 : i32
    %c0_i32_0 = arith.constant 0 : i32
    %c0_i32_1 = arith.constant 0 : i32
    return %c0_i32, %c0_i32_0 : i32, i32
  }
  func.func @transform_5(%arg0: i32) -> (i32, i32) {
    %c0_i32 = arith.constant 0 : i32
    %c0_i32_0 = arith.constant 0 : i32
    return %arg0, %c0_i32 : i32, i32
  }
}

</mosaic_0001>

<bundles_post_ra>
// kernel: tpu_custom_call.1
= control target key start
LH: loop header
LB: loop body
LE: loop exit
PB: predicated region body
PF: predicated region fallthrough
CT: control target
= control target key end

     0   :  { %v394_v3 = vmov 0.0|0.0   ;;  %vm37_vm0 = vcmask 261120   ;;  %vm395_vm1 = vmmov 0   ;;  %v396_v8 = vmov 0.0   ;;  %s489_s0 = inlined_call_operand.vmem [shape: f32[2,8,32], index: 0, kind: input, shape index: {}]   ;;  %s490_s1 = inlined_call_operand.vmem [shape: f32[2,8,1], index: 1, kind: input, shape index: {}]   ;;  %s491_s2 = inlined_call_operand.vmem [shape: f32[32,16], index: 2, kind: input, shape index: {}]   ;;  %s492_s3 = inlined_call_operand.vmem [shape: f32[1,16], index: 3, kind: input, shape index: {}]   ;;  %s493_s4 = inlined_call_operand.vmem [shape: f32[1,16], index: 4, kind: input, shape index: {}]   ;;  %s494_s5 = inlined_call_operand.hbm [shape: f32[2,32], index: 5, kind: output, shape index: {}]  }
   0x1   :  { %v25_v0 = vld [vmem:[%s491_s2] sm:$0xff]  ;;  %v26_v1 = vld [vmem:[%s491_s2 + $0x8] sm:$0xff]  ;;  %v27_v2 = vld [vmem:[%s491_s2 + $0x10] sm:$0xff]  ;;  %339 = vmatprep.subr.bf16.mxu0 %v394_v3  ;;  %345 = vmatprep.subr.bf16.mxu1 %v394_v3 }
   0x2   :  { %v340_v4 = vpack.c.bf16 %v26_v1, %v25_v0  ;;  %v28_v5 = vld [vmem:[%s491_s2 + $0x18] sm:$0xff]  ;;  %v21_v6 = vld [vmem:[%s489_s0] sm:$0xff]  ;;  %v22_v7 = vld [vmem:[%s489_s0 + $0x8] sm:$0xff]  ;;  %325 = vmatprep.mubr.msk.f32.mxu0 %vm395_vm1, %v396_v8  ;;  %336 = vmatprep.mubr.msk.f32.mxu1 %vm395_vm1, %v396_v8 }
   0x3   :  { %v448_v9 = vsel %vm37_vm0, %v21_v6, 0.0  ;;  %v451_v10 = vsel %vm37_vm0, %v22_v7, 0.0 }
   0x4   :  { %10 = vsyncpa [#allocation3], 0  ;;  %341 = vmatpush3.bf16.msra.mxu0 %v340_v4  ;;  %347 = vmatpush3.bf16.msra.mxu1 %v340_v4  ;;  %v343_v11 = vpack.c.bf16 %v28_v5, %v27_v2  ;;  %v303_v12 = vld [vmem:[%s492_s3] ss:$0 sm:$0xff]  ;;  %vm194_vm2 = vcmask 130048   ;;  %v397_v26 = vmov 0  }
   0x5   :  { %342 = vmatprep.subr.bf16.mxu0 %v394_v3  ;;  %348 = vmatprep.subr.bf16.mxu1 %v394_v3  ;;  %v306_v19 = vld [vmem:[%s493_s4] ss:$0 sm:$0xff]  ;;  %vm203_vm3 = vcmask 7168   ;;  %v24_v30 = vld [vmem:[%s490_s1 + $0x8] sm:$0xff]  ;;  %vm284_vm4 = vcmask 1041409   ;;  %vm287_vm5 = vcmask 254976  }
   0x6   :  { %356 = vset.pattern.permute.xlu1 %v397_v26  ;;  %357 = vset.pattern.permute.xlu0 %v397_v26  ;;  %v23_v27 = vld [vmem:[%s490_s1] sm:$0xff]  ;;  %s398_s1 = smov [#allocation2]  }
   0x7   :  { %s295_s9 = sshll.u32 %s398_s1, 4  ;;  %s296_s9 = int_to_ptr.vmem [resolvable:$true] %s295_s9 }
   0x8   :  { %344 = vmatpush3.bf16.msra.mxu0 %v343_v11  ;;  %350 = vmatpush3.bf16.msra.mxu1 %v343_v11  ;;  %s370_s10 = scalar_lea.vmem %s296_s9, 32  ;;  %p375_p1 = scmp.lt.s32.totalorder %s296_s9, %s296_s9 }
   0x9   :  { %p371_p0 = scmp.ne.s32.totalorder %s296_s9, %s370_s10  ;;  %p376_p2 = scmp.lt.s32.totalorder %s370_s10, %s370_s10 }
   0xb   :  { %326 = vmatmul.mubr.msk.f32.vlgmr.msra.gmra.mrb[0].mxu0 %vm37_vm0, %v21_v6  ;;  %337 = vmatmul.mubr.msk.f32.vlgmr.msra.gmra.mrb[0].mxu1 %vm37_vm0, %v22_v7  ;;  %p377_p3 = por %p376_p2, %p375_p1 }
   0xd   :  { %p378_p4 = pnand %p377_p3, %p371_p0 }
  0xde   :  { %v107_v13 = vpop.f32.mrb[0].mxu0  ;;  %v180_v14 = vpop.f32.mrb[0].mxu1 }
  0xdf   :  { %v108_v15 = vadd.f32 %v303_v12, %v107_v13  ;;  %v327_v16 = vpop.f32.mrb[1].mxu0  ;;  %v181_v17 = vadd.f32 %v303_v12, %v180_v14  ;;  %v338_v18 = vpop.f32.mrb[1].mxu1 }
  0xe1   :  { %358 = vtanh.f32 %v108_v15 }
  0xe2   :  { %360 = vtanh.f32 %v181_v17 }
  0xeb   :  { %v359_v20 = vpop.eup %358 }
  0xec   :  { %v361_v21 = vpop.eup %360  ;;  %v192_v22 = vmul.f32 %v359_v20, %v306_v19 }
  0xed   :  { %v193_v23 = vmul.f32 %v361_v21, %v306_v19 }
  0xee   :  { %v195_v24 = vsel %vm194_vm2, %v192_v22, 0.0 }
  0xef   :  { %196 = vadd.xlane.f32.xlu0 %v195_v24  ;;  %v198_v25 = vsel %vm194_vm2, %v193_v23, 0.0  ;;  %v257_v23 = vrot.slane %v448_v9, 4  ;;  %v264_v24 = vrot.slane %v451_v10, 4 }
  0xf1   :  { %v265_v26 = vadd.f32 %v264_v24, %v451_v10 }
  0xf3   :  { %199 = vadd.xlane.f32.xlu0 %v198_v25  ;;  %v258_v25 = vadd.f32 %v257_v23, %v448_v9 }
 0x17c   :  { %v197_v28 = vpop.xlane.xlu0 %196 }
 0x17d   :  { %v201_v29 = vmul.f32 %v197_v28, %v23_v27  ;;  %v259_v27 = vrot.slane %v258_v25, 2  ;;  %v266_v28 = vrot.slane %v265_v26, 2 }
 0x17f   :  { %v204_v31 = vsel %vm203_vm3, %v201_v29, -inf }
 0x180   :  { %v205_v32 = vrot.slane %v204_v31, 4  ;;  %v200_v33 = vpop.xlane.xlu0 %199 }
 0x181   :  { %v202_v34 = vmul.f32 %v200_v33, %v24_v30  ;;  %v267_v30 = vadd.f32 %v266_v28, %v265_v26 }
 0x182   :  { %v206_v35 = vmax.f32 %v204_v31, %v205_v32 }
 0x183   :  { %v211_v36 = vsel %vm203_vm3, %v202_v34, -inf  ;;  %v268_v32 = vrot.slane %v267_v30, 1 }
 0x184   :  { %v207_v37 = vrot.slane %v206_v35, 2  ;;  %v212_v38 = vrot.slane %v211_v36, 4 }
 0x186   :  { %v208_v39 = vmax.f32 %v206_v35, %v207_v37  ;;  %v213_v40 = vmax.f32 %v211_v36, %v212_v38  ;;  %v269_v35 = vadd.f32 %v268_v32, %v267_v30 }
 0x188   :  { %v209_v41 = vrot.slane %v208_v39, 1  ;;  %v214_v42 = vrot.slane %v213_v40, 2 }
 0x18a   :  { %v210_v43 = vmax.f32 %v208_v39, %v209_v41  ;;  %v215_v44 = vmax.f32 %v213_v40, %v214_v42 }
 0x18c   :  { %v218_v45 = vsub.f32 %v201_v29, %v210_v43  ;;  %v216_v46 = vrot.slane %v215_v44, 1  ;;  %v260_v29 = vadd.f32 %v259_v27, %v258_v25 }
 0x18e   :  { %v220_v47 = vmul.f32 1.442695, %v218_v45  ;;  %v217_v48 = vmax.f32 %v215_v44, %v216_v46  ;;  %v261_v31 = vrot.slane %v260_v29, 1 }
 0x190   :  { %362 = vpow2.f32 %v220_v47  ;;  %v219_v49 = vsub.f32 %v202_v34, %v217_v48  ;;  %v262_v34 = vadd.f32 %v261_v31, %v260_v29 }
 0x192   :  { %v222_v50 = vmul.f32 1.442695, %v219_v49 }
 0x194   :  { %364 = vpow2.f32 %v222_v50 }
 0x19a   :  { %v363_v51 = vpop.eup %362 }
 0x19b   :  { %v224_v52 = vsel %vm203_vm3, %v363_v51, 0.0 }
 0x19c   :  { %v225_v53 = vrot.slane %v224_v52, 4 }
 0x19e   :  { %v365_v54 = vpop.eup %364  ;;  %v226_v55 = vadd.f32 %v225_v53, %v224_v52 }
 0x19f   :  { %v231_v56 = vsel %vm203_vm3, %v365_v54, 0.0 }
 0x1a0   :  { %v227_v57 = vrot.slane %v226_v55, 2  ;;  %v232_v58 = vrot.slane %v231_v56, 4 }
 0x1a2   :  { %v228_v59 = vadd.f32 %v227_v57, %v226_v55  ;;  %v233_v60 = vadd.f32 %v232_v58, %v231_v56 }
 0x1a4   :  { %v229_v61 = vrot.slane %v228_v59, 1  ;;  %v234_v62 = vrot.slane %v233_v60, 2 }
 0x1a6   :  { %v230_v63 = vadd.f32 %v229_v61, %v228_v59  ;;  %v235_v0 = vadd.f32 %v234_v62, %v233_v60 }
 0x1a8   :  { %v236_v1 = vrot.slane %v235_v0, 1  ;;  %366 = vrcp.f32 %v230_v63 }
 0x1aa   :  { %v237_v2 = vadd.f32 %v236_v1, %v235_v0 }
 0x1ac   :  { %368 = vrcp.f32 %v237_v2 }
 0x1b2   :  { %v367_v3 = vpop.eup %366 }
 0x1b3   :  { %v239_v4 = vmul.f32 %v367_v3, %v363_v51 }
 0x1b5   :  { %v242_v5 = vsel %vm203_vm3, %v239_v4, 0.0 }
 0x1b6   :  { %v369_v6 = vpop.eup %368  ;;  %v243_v7 = vrot.slane %v242_v5, 4 }
 0x1b7   :  { %v241_v8 = vmul.f32 %v369_v6, %v365_v54 }
 0x1b8   :  { %v244_v11 = vadd.f32 %v243_v7, %v242_v5 }
 0x1b9   :  { %v249_v12 = vsel %vm203_vm3, %v241_v8, 0.0 }
 0x1ba   :  { %v245_v13 = vrot.slane %v244_v11, 2  ;;  %v250_v14 = vrot.slane %v249_v12, 4 }
 0x1bc   :  { %v246_v15 = vadd.f32 %v245_v13, %v244_v11  ;;  %v251_v16 = vadd.f32 %v250_v14, %v249_v12 }
 0x1be   :  { %v247_v17 = vrot.slane %v246_v15, 1  ;;  %v252_v18 = vrot.slane %v251_v16, 2 }
 0x1c0   :  { %v248_v19 = vadd.f32 %v247_v17, %v246_v15  ;;  %v253_v20 = vadd.f32 %v252_v18, %v251_v16 }
 0x1c2   :  { %272 = vperm.xlu1 %356, %v248_v19   ;;  %v254_v21 = vrot.slane %v253_v20, 1 }
 0x1c4   :  { %v255_v22 = vadd.f32 %v254_v21, %v253_v20 }
 0x1c6   :  { %277 = vperm.xlu1 %356, %v255_v22  }
 0x241   :  { %v273_v33 = vpop.permute.xlu1 %272 }
 0x242   :  { %v280_v37 = vadd.f32 %v273_v33, %v262_v34 }
 0x245   :  { %v278_v36 = vpop.permute.xlu1 %277 }
 0x246   :  { %v281_v38 = vadd.f32 %v278_v36, %v269_v35 }
 0x248   :  { %v285_v9 = vsel %vm284_vm4, %v281_v38, %v280_v37 }
 0x249   :  { %288 = vst.msk [vmem:[#allocation2] sm:$0x3] %vm287_vm5, %v285_v9 }
 0x24a   :  { %381 = shalt.err (!%p378_p4)
}
 0x24b   :  { %s382_s13 = scalar_lea.hbm %s494_s5, 32 }
 0x24c   :  { %p383_p5 = scmp.ne.s32.totalorder %s494_s5, %s382_s13  ;;  %p386_p6 = scmp.lt.u32.totalorder %s382_s13, %s494_s5 }
 0x24e   :  { %p388_p7 = pnand %p386_p6, %p383_p5 }
 0x250   :  { %391 = shalt.err (!%p388_p7)
}
 0x251   :  { %298 = dma.vmem_to_hbm [thread:$0]  %s296_s9, 32, %s494_s5, [#allocation3]  }
 0x252   :  { %392 = dma.done.wait [#allocation3], 32  }
 0x253   :  { %393 = vsyncadd [#allocation3], 4294967264 }
 0x254   :  { %302 = vsyncpa [#allocation3], 1 }

</bundles_post_ra>
